<compile_context>
chip_gen: v7x
topology: tpu7x:2x2x1
jax: 0.10.0
libtpu: 0.0.40
codegen_flags: <defaults>
</compile_context>

<pallas_src>
import jax
import jax.numpy as jnp
from jax.experimental import pallas as pl
from jax.experimental.pallas import tpu as pltpu

IN_FEATURES = 28 * 28          # 784
K_PAD = 896                    # 7 * 128: lane-aligned contraction dim
HIDDEN = 256
OUT_FEATURES = 10
OUT_PAD = 128                  # lane-dense output width


def _round_up(x, m):
    return (x + m - 1) // m * m


def _mlp_kernel(x_ref, w1_ref, b1_ref, w2_ref, b2_ref, o_ref):
    # fc1 (MXU) + bias + ReLU (VPU) + fc2 (MXU) + bias, fused on one tile.
    h = jnp.dot(x_ref[...], w1_ref[...],
                preferred_element_type=jnp.float32)       # (TB, 256)
    h = jnp.maximum(h + b1_ref[...], 0.0)                 # ReLU, bias bcast (1,256)
    y = jnp.dot(h, w2_ref[...],
                preferred_element_type=jnp.float32)       # (TB, 128) lane-dense
    o_ref[...] = (y + b2_ref[...]).astype(o_ref.dtype)


def simple_mlp_forward(x, w1, b1, w2, b2, *, tb=1024):
    """x: (B, 1, 28, 28) float32 -> (B, 10) float32.

    w1: (784, 256), b1: (256,), w2: (256, 10), b2: (10,)
    (weights stored as (in, out); equivalent to PyTorch x @ W.T + b).
    """
    B = x.shape[0]
    x2d = x.reshape(B, -1)                                 # nn.Flatten semantics

    # Batch tile: multiple of 8 sublanes, no larger than needed for small B,
    # capped at `tb` so double-buffered tiles stay inside scoped VMEM on all gens.
    TB = min(tb, _round_up(B, 8))
    B_pad = _round_up(B, TB)

    # Zero-pad: batch rows (ragged last tile), K 784->896, output cols 10->128.
    x_p = jnp.pad(x2d, ((0, B_pad - B), (0, K_PAD - IN_FEATURES)))
    w1_p = jnp.pad(w1, ((0, K_PAD - IN_FEATURES), (0, 0)))        # (896, 256)
    w2_p = jnp.pad(w2, ((0, 0), (0, OUT_PAD - OUT_FEATURES)))     # (256, 128)
    b1_2d = b1.reshape(1, HIDDEN)
    b2_2d = jnp.pad(b2, (0, OUT_PAD - OUT_FEATURES)).reshape(1, OUT_PAD)

    grid = (B_pad // TB,)

    flops = 2 * B_pad * (K_PAD * HIDDEN + HIDDEN * OUT_PAD)
    bytes_accessed = 4 * (B_pad * K_PAD + K_PAD * HIDDEN + HIDDEN
                          + HIDDEN * OUT_PAD + OUT_PAD + B_pad * OUT_PAD)

    out_padded = pl.pallas_call(
        _mlp_kernel,
        out_shape=jax.ShapeDtypeStruct((B_pad, OUT_PAD), jnp.float32),
        grid=grid,
        in_specs=[
            # activation stream: tiled over batch (pipelined)
            pl.BlockSpec((TB, K_PAD), lambda i: (i, 0)),
            # weights / biases: constant index_map -> DMA'd once, VMEM-resident
            pl.BlockSpec((K_PAD, HIDDEN), lambda i: (0, 0)),
            pl.BlockSpec((1, HIDDEN), lambda i: (0, 0)),
            pl.BlockSpec((HIDDEN, OUT_PAD), lambda i: (0, 0)),
            pl.BlockSpec((1, OUT_PAD), lambda i: (0, 0)),
        ],
        out_specs=pl.BlockSpec((TB, OUT_PAD), lambda i: (i, 0)),
        compiler_params=pltpu.CompilerParams(
            dimension_semantics=("parallel",)),            # megacore on v7x
        cost_estimate=pl.CostEstimate(
            flops=flops, transcendentals=0, bytes_accessed=bytes_accessed),
    )(x_p, w1_p, b1_2d, w2_p, b2_2d)

    return out_padded[:B, :OUT_FEATURES]


def init_params(key):
    """PyTorch-style Linear init; weights stored (in, out) for x @ W."""
    k1, k2, k3, k4 = jax.random.split(key, 4)
    bound1 = 1.0 / jnp.sqrt(IN_FEATURES)
    bound2 = 1.0 / jnp.sqrt(HIDDEN)
    w1 = jax.random.uniform(k1, (IN_FEATURES, HIDDEN), jnp.float32, -bound1, bound1)
    b1 = jax.random.uniform(k2, (HIDDEN,), jnp.float32, -bound1, bound1)
    w2 = jax.random.uniform(k3, (HIDDEN, OUT_FEATURES), jnp.float32, -bound2, bound2)
    b2 = jax.random.uniform(k4, (OUT_FEATURES,), jnp.float32, -bound2, bound2)
    return w1, b1, w2, b2


if __name__ == "__main__":
    key = jax.random.PRNGKey(0)
    kx, kp = jax.random.split(key)

    B = 2
    x = jax.random.normal(kx, (B, 1, 28, 28), jnp.float32)
    w1, b1, w2, b2 = init_params(kp)

    out = simple_mlp_forward(x, w1, b1, w2, b2)
    out = jax.block_until_ready(out)

    # Reference check in plain JAX
    x2d = x.reshape(B, -1)
    ref = jnp.maximum(x2d @ w1 + b1, 0.0) @ w2 + b2
    assert out.shape == (B, OUT_FEATURES)
    assert jnp.allclose(out, ref, atol=1e-4, rtol=1e-4)

    print("KERNEL_OK")
</pallas_src>

<mosaic_0001>
module attributes {stable_mosaic.version = 11 : i64} {
  func.func @_mlp_kernel(%arg0: i32, %arg1: memref<8x896xf32, #tpu.memory_space<vmem>>, %arg2: memref<896x256xf32, #tpu.memory_space<vmem>>, %arg3: memref<1x256xf32, #tpu.memory_space<vmem>>, %arg4: memref<256x128xf32, #tpu.memory_space<vmem>>, %arg5: memref<1x128xf32, #tpu.memory_space<vmem>>, %arg6: memref<8x128xf32, #tpu.memory_space<vmem>>) attributes {dimension_semantics = [#tpu.dimension_semantics<parallel>], iteration_bounds = array<i64: 1>, scalar_prefetch = 0 : i64, scratch_operands = 0 : i64, tpu.core_type = #tpu.core_type<tc>, window_params = [{transform_indices = @transform_0, window_bounds = array<i64: 8, 896>}, {pipeline_mode = #tpu.pipeline_mode<synchronous>, transform_indices = @transform_1, window_bounds = array<i64: 896, 256>}, {pipeline_mode = #tpu.pipeline_mode<synchronous>, transform_indices = @transform_2, window_bounds = array<i64: 1, 256>}, {pipeline_mode = #tpu.pipeline_mode<synchronous>, transform_indices = @transform_3, window_bounds = array<i64: 256, 128>}, {pipeline_mode = #tpu.pipeline_mode<synchronous>, transform_indices = @transform_4, window_bounds = array<i64: 1, 128>}, {transform_indices = @transform_5, window_bounds = array<i64: 8, 128>}]} {
    %c0 = arith.constant 0 : index
    %c0_0 = arith.constant 0 : index
    %0 = vector.load %arg1[%c0, %c0_0] : memref<8x896xf32, #tpu.memory_space<vmem>>, vector<8x896xf32>
    %c0_1 = arith.constant 0 : index
    %c0_2 = arith.constant 0 : index
    %1 = vector.load %arg2[%c0_1, %c0_2] : memref<896x256xf32, #tpu.memory_space<vmem>>, vector<896x256xf32>
    %cst = arith.constant dense<0.000000e+00> : vector<8x256xf32>
    %2 = tpu.matmul %0, %1, %cst {dimension_numbers = #tpu.dot_dimension_numbers<[1], [0], [0], [1], [0, 0, 1, 1], [], []>} : vector<8x896xf32>, vector<896x256xf32>, vector<8x256xf32> -> vector<8x256xf32>
    %c0_3 = arith.constant 0 : index
    %c0_4 = arith.constant 0 : index
    %3 = vector.load %arg3[%c0_3, %c0_4] : memref<1x256xf32, #tpu.memory_space<vmem>>, vector<1x256xf32>
    %4 = vector.broadcast %3 : vector<1x256xf32> to vector<8x256xf32>
    %5 = arith.addf %2, %4 : vector<8x256xf32>
    %cst_5 = arith.constant 0.000000e+00 : f32
    %6 = vector.broadcast %cst_5 : f32 to vector<8x256xf32>
    %7 = arith.maximumf %5, %6 : vector<8x256xf32>
    %c0_6 = arith.constant 0 : index
    %c0_7 = arith.constant 0 : index
    %8 = vector.load %arg4[%c0_6, %c0_7] : memref<256x128xf32, #tpu.memory_space<vmem>>, vector<256x128xf32>
    %cst_8 = arith.constant dense<0.000000e+00> : vector<8x128xf32>
    %9 = tpu.matmul %7, %8, %cst_8 {dimension_numbers = #tpu.dot_dimension_numbers<[1], [0], [0], [1], [0, 0, 1, 1], [], []>} : vector<8x256xf32>, vector<256x128xf32>, vector<8x128xf32> -> vector<8x128xf32>
    %c0_9 = arith.constant 0 : index
    %c0_10 = arith.constant 0 : index
    %10 = vector.load %arg5[%c0_9, %c0_10] : memref<1x128xf32, #tpu.memory_space<vmem>>, vector<1x128xf32>
    %11 = vector.broadcast %10 : vector<1x128xf32> to vector<8x128xf32>
    %12 = arith.addf %9, %11 : vector<8x128xf32>
    %c0_11 = arith.constant 0 : index
    %c0_12 = arith.constant 0 : index
    %13 = vector.load %arg6[%c0_11, %c0_12] : memref<8x128xf32, #tpu.memory_space<vmem>>, vector<8x128xf32>
    tpu.vector_store %arg6[%c0_11, %c0_12], %12 {strides = array<i32>} : memref<8x128xf32, #tpu.memory_space<vmem>>, vector<8x128xf32>,
    return
  }
  func.func @transform_0(%arg0: i32) -> (i32, i32) {
    %c0_i32 = arith.constant 0 : i32
    %c0_i32_0 = arith.constant 0 : i32
    return %arg0, %c0_i32 : i32, i32
  }
  func.func @transform_1(%arg0: i32) -> (i32, i32) {
    %c0_i32 = arith.constant 0 : i32
    %c0_i32_0 = arith.constant 0 : i32
    %c0_i32_1 = arith.constant 0 : i32
    return %c0_i32, %c0_i32_0 : i32, i32
  }
  func.func @transform_2(%arg0: i32) -> (i32, i32) {
    %c0_i32 = arith.constant 0 : i32
    %c0_i32_0 = arith.constant 0 : i32
    %c0_i32_1 = arith.constant 0 : i32
    return %c0_i32, %c0_i32_0 : i32, i32
  }
  func.func @transform_3(%arg0: i32) -> (i32, i32) {
    %c0_i32 = arith.constant 0 : i32
    %c0_i32_0 = arith.constant 0 : i32
    %c0_i32_1 = arith.constant 0 : i32
    return %c0_i32, %c0_i32_0 : i32, i32
  }
  func.func @transform_4(%arg0: i32) -> (i32, i32) {
    %c0_i32 = arith.constant 0 : i32
    %c0_i32_0 = arith.constant 0 : i32
    %c0_i32_1 = arith.constant 0 : i32
    return %c0_i32, %c0_i32_0 : i32, i32
  }
  func.func @transform_5(%arg0: i32) -> (i32, i32) {
    %c0_i32 = arith.constant 0 : i32
    %c0_i32_0 = arith.constant 0 : i32
    return %arg0, %c0_i32 : i32, i32
  }
}

</mosaic_0001>

<bundles_post_ra>
// kernel: tpu_custom_call.1
= control target key start
LH: loop header
LB: loop body
LE: loop exit
PB: predicated region body
PF: predicated region fallthrough
CT: control target
= control target key end

     0   :  { %10 = vsyncpa [#allocation3], 0  ;;  %s1211_s0 = inlined_call_operand.hbm [shape: f32[8,896], index: 0, kind: input, shape index: {}]   ;;  %s1212_s1 = inlined_call_operand.hbm [shape: f32[896,256], index: 1, kind: input, shape index: {}]   ;;  %s1213_s2 = inlined_call_operand.vmem [shape: f32[1,256], index: 2, kind: input, shape index: {}]   ;;  %s1214_s3 = inlined_call_operand.hbm [shape: f32[256,128], index: 3, kind: input, shape index: {}]   ;;  %s1215_s4 = inlined_call_operand.vmem [shape: f32[1,128], index: 4, kind: input, shape index: {}]   ;;  %s1216_s5 = inlined_call_operand.hbm [shape: f32[8,128], index: 5, kind: output, shape index: {}]  }
   0x1   :  { %11 = vsyncpa [#allocation6], 0 }
   0x2   :  { %12 = vsyncpa [#allocation4], 0  ;;  %s1118_s18 = smov [#allocation5]   ;;  %s1024_s22 = scalar_lea.hbm %s1212_s1, 28672 }
   0x3   :  { %s28_s19 = sshll.u32 %s1118_s18, 4  ;;  %p1025_p0 = scmp.ne.s32.totalorder %s1212_s1, %s1024_s22  ;;  %s29_s19 = int_to_ptr.vmem [resolvable:$true] %s28_s19 }
   0x4   :  { %p1028_p1 = scmp.lt.u32.totalorder %s1024_s22, %s1212_s1 }
   0x6   :  { %p1030_p2 = pnand %p1028_p1, %p1025_p0 }
   0x8   :  { %1033 = shalt.err (!%p1030_p2)
}
   0x9   :  { %s1034_s27 = scalar_lea.vmem %s29_s19, 28672  ;;  %p1039_p4 = scmp.lt.s32.totalorder %s29_s19, %s29_s19 }
   0xa   :  { %p1035_p3 = scmp.ne.s32.totalorder %s29_s19, %s1034_s27  ;;  %p1040_p5 = scmp.lt.s32.totalorder %s1034_s27, %s1034_s27 }
   0xc   :  { %p1041_p6 = por %p1040_p5, %p1039_p4 }
   0xe   :  { %p1042_p7 = pnand %p1041_p6, %p1035_p3 }
  0x10   :  { %1045 = shalt.err (!%p1042_p7)
}
  0x11   :  { %s1119_s28 = smov 256   ;;  %s1120_s29 = smov 16  }
  0x12   :  { %34 = dma.hbm_to_vmem [thread:$0]  %s1212_s1, 28672, %s29_s19, [#allocation6], %s1119_s28, %s1119_s28, %s1120_s29  }
  0x13   :  { %s1121_s7 = smov [#allocation2]   ;;  %s1122_s9 = smov [#allocation7]  }
  0x14   :  { %s19_s8 = sshll.u32 %s1121_s7, 4  ;;  %s42_s10 = sshll.u32 %s1122_s9, 4  ;;  %s20_s8 = int_to_ptr.vmem [resolvable:$true] %s19_s8  ;;  %s43_s10 = int_to_ptr.vmem [resolvable:$true] %s42_s10 }
  0x15   :  { %s1046_s13 = scalar_lea.hbm %s1211_s0, 896 }
  0x16   :  { %p1047_p8 = scmp.ne.s32.totalorder %s1211_s0, %s1046_s13  ;;  %p1050_p9 = scmp.lt.u32.totalorder %s1046_s13, %s1211_s0 }
  0x18   :  { %p1052_p10 = pnand %p1050_p9, %p1047_p8 }
  0x1a   :  { %1055 = shalt.err (!%p1052_p10)
}
  0x1b   :  { %s1056_s1 = scalar_lea.vmem %s20_s8, 896  ;;  %p1061_p12 = scmp.lt.s32.totalorder %s20_s8, %s20_s8 }
  0x1c   :  { %p1057_p11 = scmp.ne.s32.totalorder %s20_s8, %s1056_s1  ;;  %p1062_p13 = scmp.lt.s32.totalorder %s1056_s1, %s1056_s1 }
  0x1e   :  { %p1063_p0 = por %p1062_p13, %p1061_p12 }
  0x20   :  { %p1064_p1 = pnand %p1063_p0, %p1057_p11 }
  0x22   :  { %1067 = shalt.err (!%p1064_p1)
}
  0x23   :  { %22 = dma.hbm_to_vmem [thread:$0]  %s1211_s0, 896, %s20_s8, [#allocation3]  }
  0x24   :  { %s1068_s22 = scalar_lea.hbm %s1214_s3, 4096 }
  0x25   :  { %p1069_p2 = scmp.ne.s32.totalorder %s1214_s3, %s1068_s22  ;;  %p1072_p3 = scmp.lt.u32.totalorder %s1068_s22, %s1214_s3 }
  0x27   :  { %p1074_p4 = pnand %p1072_p3, %p1069_p2 }
  0x29   :  { %1077 = shalt.err (!%p1074_p4)
}
  0x2a   :  { %s1078_s27 = scalar_lea.vmem %s43_s10, 4096  ;;  %p1083_p6 = scmp.lt.s32.totalorder %s43_s10, %s43_s10 }
  0x2b   :  { %p1079_p5 = scmp.ne.s32.totalorder %s43_s10, %s1078_s27  ;;  %p1084_p7 = scmp.lt.s32.totalorder %s1078_s27, %s1078_s27 }
  0x2d   :  { %p1085_p8 = por %p1084_p7, %p1083_p6 }
  0x2f   :  { %p1086_p9 = pnand %p1085_p8, %p1079_p5 }
  0x31   :  { %1089 = shalt.err (!%p1086_p9)
}
  0x32   :  { %s1123_s0 = smov 128   ;;  %s1124_s28 = smov 8  }
  0x33   :  { %48 = dma.hbm_to_vmem [thread:$0]  %s1214_s3, 4096, %s43_s10, [#allocation6], %s1123_s0, %s1123_s0, %s1124_s28  }
  0x34   :  { %1112 = dma.done.wait [#allocation3], 896  }
  0x35   :  { %1113 = vsyncadd [#allocation3], 4294966400 }
  0x36   :  { %1114 = dma.done.wait [#allocation6], 32768  }
  0x37   :  { %1115 = vsyncadd [#allocation6], 4294934528  ;;  %v132_v0 = vld [vmem:[#allocation5 + $0x208] sm:$0xff]  ;;  %v134_v1 = vld [vmem:[#allocation5 + $0x218] sm:$0xff] }
  0x38   :  { %v131_v2 = vld [vmem:[#allocation5 + $0x200] sm:$0xff]  ;;  %v815_v3 = vpack.c.bf16 %v134_v1, %v132_v0  ;;  %v133_v4 = vld [vmem:[#allocation5 + $0x210] sm:$0xff]  ;;  %v136_v5 = vld [vmem:[#allocation5 + $0x228] sm:$0xff] }
  0x39   :  { %v138_v6 = vld [vmem:[#allocation5 + $0x238] sm:$0xff]  ;;  %v817_v7 = vpack.c.bf16 %v133_v4, %v131_v2  ;;  %v135_v9 = vld [vmem:[#allocation5 + $0x220] sm:$0xff]  ;;  %v137_v10 = vld [vmem:[#allocation5 + $0x230] sm:$0xff] }
  0x3a   :  { %v819_v8 = vpack.c.bf16 %v138_v6, %v136_v5  ;;  %v140_v11 = vld [vmem:[#allocation5 + $0x248] sm:$0xff]  ;;  %816 = vmatprep.subr.bf16.mxu0 %v815_v3  ;;  %v142_v12 = vld [vmem:[#allocation5 + $0x258] sm:$0xff]  ;;  %v821_v13 = vpack.c.bf16 %v137_v10, %v135_v9  ;;  %v139_v15 = vld [vmem:[#allocation5 + $0x240] sm:$0xff] }
  0x3b   :  { %818 = vmatpush1.bf16.msra.mxu0 %v817_v7  ;;  %v823_v14 = vpack.c.bf16 %v142_v12, %v140_v11  ;;  %v141_v16 = vld [vmem:[#allocation5 + $0x250] sm:$0xff]  ;;  %v144_v17 = vld [vmem:[#allocation5 + $0x268] sm:$0xff]  ;;  %v146_v18 = vld [vmem:[#allocation5 + $0x278] sm:$0xff] }
  0x3c   :  { %820 = vmatprep.subr.bf16.mxu0 %v819_v8  ;;  %v825_v19 = vpack.c.bf16 %v141_v16, %v139_v15  ;;  %v827_v20 = vpack.c.bf16 %v146_v18, %v144_v17  ;;  %v143_v21 = vld [vmem:[#allocation5 + $0x260] sm:$0xff]  ;;  %v145_v22 = vld [vmem:[#allocation5 + $0x270] sm:$0xff]  ;;  %v148_v23 = vld [vmem:[#allocation5 + $0x288] sm:$0xff] }
  0x3d   :  { %v150_v24 = vld [vmem:[#allocation5 + $0x298] sm:$0xff]  ;;  %v68_v25 = vld [vmem:[#allocation5 + $0x8] sm:$0xff]  ;;  %v829_v27 = vpack.c.bf16 %v145_v22, %v143_v21  ;;  %v147_v28 = vld [vmem:[#allocation5 + $0x280] sm:$0xff] }
  0x3e   :  { %v70_v26 = vld [vmem:[#allocation5 + $0x18] sm:$0xff]  ;;  %v67_v30 = vld [vmem:[#allocation5] sm:$0xff]  ;;  %v831_v31 = vpack.c.bf16 %v150_v24, %v148_v23  ;;  %v149_v32 = vld [vmem:[#allocation5 + $0x290] sm:$0xff] }
  0x3f   :  { %822 = vmatpush1.bf16.msra.mxu0 %v821_v13  ;;  %v751_v29 = vpack.c.bf16 %v70_v26, %v68_v25  ;;  %v152_v33 = vld [vmem:[#allocation5 + $0x2a8] sm:$0xff]  ;;  %v69_v34 = vld [vmem:[#allocation5 + $0x10] sm:$0xff]  ;;  %v154_v35 = vld [vmem:[#allocation5 + $0x2b8] sm:$0xff]  ;;  %v833_v42 = vpack.c.bf16 %v149_v32, %v147_v28 }
  0x40   :  { %824 = vmatprep.subr.bf16.mxu0 %v823_v14  ;;  %v753_v36 = vpack.c.bf16 %v69_v34, %v67_v30  ;;  %v72_v37 = vld [vmem:[#allocation5 + $0x28] sm:$0xff]  ;;  %v74_v38 = vld [vmem:[#allocation5 + $0x38] sm:$0xff]  ;;  %v71_v40 = vld [vmem:[#allocation5 + $0x20] sm:$0xff]  ;;  %v835_v46 = vpack.c.bf16 %v154_v35, %v152_v33 }
  0x41   :  { %752 = vmatprep.subr.bf16.mxu1 %v751_v29  ;;  %v755_v39 = vpack.c.bf16 %v74_v38, %v72_v37  ;;  %v73_v41 = vld [vmem:[#allocation5 + $0x30] sm:$0xff]  ;;  %v151_v43 = vld [vmem:[#allocation5 + $0x2a0] sm:$0xff]  ;;  %v76_v45 = vld [vmem:[#allocation5 + $0x48] sm:$0xff] }
  0x42   :  { %754 = vmatpush1.bf16.msra.mxu1 %v753_v36  ;;  %v757_v44 = vpack.c.bf16 %v73_v41, %v71_v40  ;;  %v153_v47 = vld [vmem:[#allocation5 + $0x2b0] sm:$0xff]  ;;  %v156_v48 = vld [vmem:[#allocation5 + $0x2c8] sm:$0xff]  ;;  %v78_v49 = vld [vmem:[#allocation5 + $0x58] sm:$0xff] }
  0x43   :  { %826 = vmatpush1.bf16.msra.mxu0 %v825_v19  ;;  %756 = vmatprep.subr.bf16.mxu1 %v755_v39  ;;  %v158_v50 = vld [vmem:[#allocation5 + $0x2d8] sm:$0xff]  ;;  %v759_v51 = vpack.c.bf16 %v78_v49, %v76_v45  ;;  %v75_v52 = vld [vmem:[#allocation5 + $0x40] sm:$0xff]  ;;  %v77_v53 = vld [vmem:[#allocation5 + $0x50] sm:$0xff]  ;;  %v837_v56 = vpack.c.bf16 %v153_v47, %v151_v43 }
  0x44   :  { %828 = vmatprep.subr.bf16.mxu0 %v827_v20  ;;  %v80_v54 = vld [vmem:[#allocation5 + $0x68] sm:$0xff]  ;;  %v82_v55 = vld [vmem:[#allocation5 + $0x78] sm:$0xff]  ;;  %v155_v57 = vld [vmem:[#allocation5 + $0x2c0] sm:$0xff]  ;;  %v761_v59 = vpack.c.bf16 %v77_v53, %v75_v52  ;;  %v839_v60 = vpack.c.bf16 %v158_v50, %v156_v48 }
  0x45   :  { %v157_v58 = vld [vmem:[#allocation5 + $0x2d0] sm:$0xff]  ;;  %v160_v61 = vld [vmem:[#allocation5 + $0x2e8] sm:$0xff]  ;;  %v763_v62 = vpack.c.bf16 %v82_v55, %v80_v54  ;;  %v79_v63 = vld [vmem:[#allocation5 + $0x60] sm:$0xff] }
  0x46   :  { %758 = vmatpush1.bf16.msra.mxu1 %v757_v44  ;;  %v81_v0 = vld [vmem:[#allocation5 + $0x70] sm:$0xff]  ;;  %v162_v1 = vld [vmem:[#allocation5 + $0x2f8] sm:$0xff]  ;;  %v84_v2 = vld [vmem:[#allocation5 + $0x88] sm:$0xff]  ;;  %v841_v4 = vpack.c.bf16 %v157_v58, %v155_v57 }
  0x47   :  { %830 = vmatpush1.bf16.msra.mxu0 %v829_v27  ;;  %760 = vmatprep.subr.bf16.mxu1 %v759_v51  ;;  %v86_v3 = vld [vmem:[#allocation5 + $0x98] sm:$0xff]  ;;  %v159_v5 = vld [vmem:[#allocation5 + $0x2e0] sm:$0xff]  ;;  %v161_v6 = vld [vmem:[#allocation5 + $0x2f0] sm:$0xff]  ;;  %v765_v7 = vpack.c.bf16 %v81_v0, %v79_v63  ;;  %v843_v8 = vpack.c.bf16 %v162_v1, %v160_v61 }
  0x48   :  { %832 = vmatprep.subr.bf16.mxu0 %v831_v31  ;;  %v164_v9 = vld [vmem:[#allocation5 + $0x308] sm:$0xff]  ;;  %v767_v10 = vpack.c.bf16 %v86_v3, %v84_v2  ;;  %v83_v11 = vld [vmem:[#allocation5 + $0x80] sm:$0xff]  ;;  %v85_v12 = vld [vmem:[#allocation5 + $0x90] sm:$0xff]  ;;  %v845_v16 = vpack.c.bf16 %v161_v6, %v159_v5 }
  0x49   :  { %v166_v13 = vld [vmem:[#allocation5 + $0x318] sm:$0xff]  ;;  %v88_v14 = vld [vmem:[#allocation5 + $0xa8] sm:$0xff]  ;;  %v163_v17 = vld [vmem:[#allocation5 + $0x300] sm:$0xff]  ;;  %v769_v19 = vpack.c.bf16 %v85_v12, %v83_v11 }
  0x4a   :  { %762 = vmatpush1.bf16.msra.mxu1 %v761_v59  ;;  %v90_v15 = vld [vmem:[#allocation5 + $0xb8] sm:$0xff]  ;;  %v165_v18 = vld [vmem:[#allocation5 + $0x310] sm:$0xff]  ;;  %v847_v20 = vpack.c.bf16 %v166_v13, %v164_v9  ;;  %v168_v21 = vld [vmem:[#allocation5 + $0x328] sm:$0xff] }
  0x4b   :  { %834 = vmatpush1.bf16.msra.mxu0 %v833_v42  ;;  %764 = vmatprep.subr.bf16.mxu1 %v763_v62  ;;  %v771_v22 = vpack.c.bf16 %v90_v15, %v88_v14  ;;  %v87_v23 = vld [vmem:[#allocation5 + $0xa0] sm:$0xff]  ;;  %v89_v24 = vld [vmem:[#allocation5 + $0xb0] sm:$0xff]  ;;  %v170_v25 = vld [vmem:[#allocation5 + $0x338] sm:$0xff]  ;;  %v849_v28 = vpack.c.bf16 %v165_v18, %v163_v17 }
  0x4c   :  { %836 = vmatprep.subr.bf16.mxu0 %v835_v46  ;;  %v92_v26 = vld [vmem:[#allocation5 + $0xc8] sm:$0xff]  ;;  %v94_v27 = vld [vmem:[#allocation5 + $0xd8] sm:$0xff]  ;;  %v167_v29 = vld [vmem:[#allocation5 + $0x320] sm:$0xff]  ;;  %v773_v31 = vpack.c.bf16 %v89_v24, %v87_v23  ;;  %v851_v33 = vpack.c.bf16 %v170_v25, %v168_v21 }
  0x4d   :  { %v169_v30 = vld [vmem:[#allocation5 + $0x330] sm:$0xff]  ;;  %v63_v32 = vld [vmem:[#allocation2 + $0x18] sm:$0xff]  ;;  %v172_v34 = vld [vmem:[#allocation5 + $0x348] sm:$0xff]  ;;  %v775_v35 = vpack.c.bf16 %v94_v27, %v92_v26 }
  0x4e   :  { %766 = vmatpush1.bf16.msra.mxu1 %v765_v7  ;;  %v91_v36 = vld [vmem:[#allocation5 + $0xc0] sm:$0xff]  ;;  %v93_v37 = vld [vmem:[#allocation5 + $0xd0] sm:$0xff]  ;;  %v174_v38 = vld [vmem:[#allocation5 + $0x358] sm:$0xff]  ;;  %438 = vmatprep.mubr.f32.mxu0 %v63_v32  ;;  %v853_v41 = vpack.c.bf16 %v169_v30, %v167_v29 }
  0x4f   :  { %838 = vmatpush1.bf16.msra.mxu0 %v837_v56  ;;  %768 = vmatprep.subr.bf16.mxu1 %v767_v10  ;;  %v96_v39 = vld [vmem:[#allocation5 + $0xe8] sm:$0xff]  ;;  %v98_v40 = vld [vmem:[#allocation5 + $0xf8] sm:$0xff]  ;;  %v171_v42 = vld [vmem:[#allocation5 + $0x340] sm:$0xff]  ;;  %v777_v44 = vpack.c.bf16 %v93_v37, %v91_v36  ;;  %v855_v45 = vpack.c.bf16 %v174_v38, %v172_v34 }
  0x50   :  { %840 = vmatprep.subr.bf16.mxu0 %v839_v60  ;;  %v173_v43 = vld [vmem:[#allocation5 + $0x350] sm:$0xff]  ;;  %v176_v46 = vld [vmem:[#allocation5 + $0x368] sm:$0xff]  ;;  %v779_v47 = vpack.c.bf16 %v98_v40, %v96_v39  ;;  %v95_v48 = vld [vmem:[#allocation5 + $0xe0] sm:$0xff] }
  0x51   :  { %v97_v49 = vld [vmem:[#allocation5 + $0xf0] sm:$0xff]  ;;  %v178_v50 = vld [vmem:[#allocation5 + $0x378] sm:$0xff]  ;;  %v100_v51 = vld [vmem:[#allocation5 + $0x108] sm:$0xff]  ;;  %v857_v53 = vpack.c.bf16 %v173_v43, %v171_v42 }
  0x52   :  { %770 = vmatpush1.bf16.msra.mxu1 %v769_v19  ;;  %v102_v52 = vld [vmem:[#allocation5 + $0x118] sm:$0xff]  ;;  %v175_v54 = vld [vmem:[#allocation5 + $0x360] sm:$0xff]  ;;  %v177_v55 = vld [vmem:[#allocation5 + $0x370] sm:$0xff]  ;;  %v781_v56 = vpack.c.bf16 %v97_v49, %v95_v48  ;;  %v859_v57 = vpack.c.bf16 %v178_v50, %v176_v46 }
  0x53   :  { %842 = vmatpush1.bf16.msra.mxu0 %v841_v4  ;;  %772 = vmatprep.subr.bf16.mxu1 %v771_v22  ;;  %v180_v58 = vld [vmem:[#allocation5 + $0x388] sm:$0xff]  ;;  %v783_v59 = vpack.c.bf16 %v102_v52, %v100_v51  ;;  %v99_v60 = vld [vmem:[#allocation5 + $0x100] sm:$0xff]  ;;  %v101_v61 = vld [vmem:[#allocation5 + $0x110] sm:$0xff]  ;;  %v861_v1 = vpack.c.bf16 %v177_v55, %v175_v54 }
  0x54   :  { %844 = vmatprep.subr.bf16.mxu0 %v843_v8  ;;  %v182_v62 = vld [vmem:[#allocation5 + $0x398] sm:$0xff]  ;;  %v104_v63 = vld [vmem:[#allocation5 + $0x128] sm:$0xff]  ;;  %v179_v2 = vld [vmem:[#allocation5 + $0x380] sm:$0xff]  ;;  %v785_v4 = vpack.c.bf16 %v101_v61, %v99_v60 }
  0x55   :  { %v106_v0 = vld [vmem:[#allocation5 + $0x138] sm:$0xff]  ;;  %v181_v3 = vld [vmem:[#allocation5 + $0x390] sm:$0xff]  ;;  %v863_v5 = vpack.c.bf16 %v182_v62, %v180_v58  ;;  %v184_v6 = vld [vmem:[#allocation5 + $0x3a8] sm:$0xff] }
  0x56   :  { %774 = vmatpush1.bf16.msra.mxu1 %v773_v31  ;;  %v787_v7 = vpack.c.bf16 %v106_v0, %v104_v63  ;;  %v103_v8 = vld [vmem:[#allocation5 + $0x120] sm:$0xff]  ;;  %v105_v9 = vld [vmem:[#allocation5 + $0x130] sm:$0xff]  ;;  %v186_v10 = vld [vmem:[#allocation5 + $0x3b8] sm:$0xff]  ;;  %v865_v13 = vpack.c.bf16 %v181_v3, %v179_v2 }
  0x57   :  { %846 = vmatpush1.bf16.msra.mxu0 %v845_v16  ;;  %776 = vmatprep.subr.bf16.mxu1 %v775_v35  ;;  %v108_v11 = vld [vmem:[#allocation5 + $0x148] sm:$0xff]  ;;  %v110_v12 = vld [vmem:[#allocation5 + $0x158] sm:$0xff]  ;;  %v183_v14 = vld [vmem:[#allocation5 + $0x3a0] sm:$0xff]  ;;  %v789_v16 = vpack.c.bf16 %v105_v9, %v103_v8  ;;  %v867_v17 = vpack.c.bf16 %v186_v10, %v184_v6 }
  0x58   :  { %848 = vmatprep.subr.bf16.mxu0 %v847_v20  ;;  %v185_v15 = vld [vmem:[#allocation5 + $0x3b0] sm:$0xff]  ;;  %v188_v18 = vld [vmem:[#allocation5 + $0x3c8] sm:$0xff]  ;;  %v791_v19 = vpack.c.bf16 %v110_v12, %v108_v11  ;;  %v107_v20 = vld [vmem:[#allocation5 + $0x140] sm:$0xff] }
  0x59   :  { %v109_v21 = vld [vmem:[#allocation5 + $0x150] sm:$0xff]  ;;  %v190_v22 = vld [vmem:[#allocation5 + $0x3d8] sm:$0xff]  ;;  %v112_v23 = vld [vmem:[#allocation5 + $0x168] sm:$0xff]  ;;  %v869_v25 = vpack.c.bf16 %v185_v15, %v183_v14 }
  0x5a   :  { %778 = vmatpush1.bf16.msra.mxu1 %v777_v44  ;;  %v114_v24 = vld [vmem:[#allocation5 + $0x178] sm:$0xff]  ;;  %v187_v26 = vld [vmem:[#allocation5 + $0x3c0] sm:$0xff]  ;;  %v189_v27 = vld [vmem:[#allocation5 + $0x3d0] sm:$0xff]  ;;  %v793_v29 = vpack.c.bf16 %v109_v21, %v107_v20  ;;  %v871_v30 = vpack.c.bf16 %v190_v22, %v188_v18 }
  0x5b   :  { %850 = vmatpush1.bf16.msra.mxu0 %v849_v28  ;;  %780 = vmatprep.subr.bf16.mxu1 %v779_v47  ;;  %v192_v28 = vld [vmem:[#allocation5 + $0x3e8] sm:$0xff]  ;;  %v194_v31 = vld [vmem:[#allocation5 + $0x3f8] sm:$0xff]  ;;  %v795_v32 = vpack.c.bf16 %v114_v24, %v112_v23  ;;  %v113_v34 = vld [vmem:[#allocation5 + $0x170] sm:$0xff]  ;;  %v873_v38 = vpack.c.bf16 %v189_v27, %v187_v26 }
  0x5c   :  { %852 = vmatprep.subr.bf16.mxu0 %v851_v33  ;;  %v111_v33 = vld [vmem:[#allocation5 + $0x160] sm:$0xff]  ;;  %v116_v35 = vld [vmem:[#allocation5 + $0x188] sm:$0xff]  ;;  %v118_v36 = vld [vmem:[#allocation5 + $0x198] sm:$0xff]  ;;  %v875_v42 = vpack.c.bf16 %v194_v31, %v192_v28 }
  0x5d   :  { %v61_v37 = vld [vmem:[#allocation2 + $0x8] sm:$0xff]  ;;  %v191_v39 = vld [vmem:[#allocation5 + $0x3e0] sm:$0xff]  ;;  %v196_v43 = vld [vmem:[#allocation5 + $0x408] sm:$0xff]  ;;  %v799_v44 = vpack.c.bf16 %v118_v36, %v116_v35 }
  0x5e   :  { %782 = vmatpush1.bf16.msra.mxu1 %v781_v56  ;;  %367 = vmatprep.mubr.f32.mxu1 %v61_v37  ;;  %v193_v40 = vld [vmem:[#allocation5 + $0x3f0] sm:$0xff]  ;;  %v198_v47 = vld [vmem:[#allocation5 + $0x418] sm:$0xff]  ;;  %v120_v48 = vld [vmem:[#allocation5 + $0x1a8] sm:$0xff] }
  0x5f   :  { %854 = vmatpush1.bf16.msra.mxu0 %v853_v41  ;;  %784 = vmatprep.subr.bf16.mxu1 %v783_v59  ;;  %v797_v41 = vpack.c.bf16 %v113_v34, %v111_v33  ;;  %v117_v46 = vld [vmem:[#allocation5 + $0x190] sm:$0xff]  ;;  %v122_v49 = vld [vmem:[#allocation5 + $0x1b8] sm:$0xff]  ;;  %v877_v50 = vpack.c.bf16 %v193_v40, %v191_v39  ;;  %v195_v51 = vld [vmem:[#allocation5 + $0x400] sm:$0xff]  ;;  %v879_v54 = vpack.c.bf16 %v198_v47, %v196_v43 }
  0x60   :  { %856 = vmatprep.subr.bf16.mxu0 %v855_v45  ;;  %v115_v45 = vld [vmem:[#allocation5 + $0x180] sm:$0xff]  ;;  %v197_v52 = vld [vmem:[#allocation5 + $0x410] sm:$0xff]  ;;  %v200_v55 = vld [vmem:[#allocation5 + $0x428] sm:$0xff]  ;;  %v803_v56 = vpack.c.bf16 %v122_v49, %v120_v48 }
  0x61   :  { %v121_v58 = vld [vmem:[#allocation5 + $0x1b0] sm:$0xff]  ;;  %v202_v59 = vld [vmem:[#allocation5 + $0x438] sm:$0xff]  ;;  %v124_v60 = vld [vmem:[#allocation5 + $0x1c8] sm:$0xff]  ;;  %v881_v63 = vpack.c.bf16 %v197_v52, %v195_v51 }
  0x62   :  { %786 = vmatpush1.bf16.msra.mxu1 %v785_v4  ;;  %v126_v61 = vld [vmem:[#allocation5 + $0x1d8] sm:$0xff]  ;;  %v199_v0 = vld [vmem:[#allocation5 + $0x420] sm:$0xff]  ;;  %v883_v3 = vpack.c.bf16 %v202_v59, %v200_v55  ;;  %v204_v4 = vld [vmem:[#allocation5 + $0x448] sm:$0xff] }
  0x63   :  { %858 = vmatpush1.bf16.msra.mxu0 %v857_v53  ;;  %788 = vmatprep.subr.bf16.mxu1 %v787_v7  ;;  %v801_v53 = vpack.c.bf16 %v117_v46, %v115_v45  ;;  %v62_v62 = vld [vmem:[#allocation2 + $0x10] sm:$0xff]  ;;  %v123_v6 = vld [vmem:[#allocation5 + $0x1c0] sm:$0xff]  ;;  %v125_v7 = vld [vmem:[#allocation5 + $0x1d0] sm:$0xff] }
  0x64   :  { %860 = vmatprep.subr.bf16.mxu0 %v859_v57  ;;  %v119_v57 = vld [vmem:[#allocation5 + $0x1a0] sm:$0xff]  ;;  %v206_v8 = vld [vmem:[#allocation5 + $0x458] sm:$0xff]  ;;  %v128_v9 = vld [vmem:[#allocation5 + $0x1e8] sm:$0xff]  ;;  %v809_v14 = vpack.c.bf16 %v125_v7, %v123_v6 }
  0x65   :  { %v805_v2 = vpack.c.bf16 %v121_v58, %v119_v57  ;;  %v130_v10 = vld [vmem:[#allocation5 + $0x1f8] sm:$0xff]  ;;  %v203_v12 = vld [vmem:[#allocation5 + $0x440] sm:$0xff]  ;;  %v887_v15 = vpack.c.bf16 %v206_v8, %v204_v4  ;;  %v260_v21 = vld [vmem:[#allocation5 + $0x608] sm:$0xff] }
  0x66   :  { %790 = vmatpush1.bf16.msra.mxu1 %v789_v16  ;;  %v208_v16 = vld [vmem:[#allocation5 + $0x468] sm:$0xff]  ;;  %v127_v18 = vld [vmem:[#allocation5 + $0x1e0] sm:$0xff]  ;;  %v210_v20 = vld [vmem:[#allocation5 + $0x478] sm:$0xff] }
  0x67   :  { %862 = vmatpush1.bf16.msra.mxu0 %v861_v1  ;;  %792 = vmatprep.subr.bf16.mxu1 %v791_v19  ;;  %v201_v1 = vld [vmem:[#allocation5 + $0x430] sm:$0xff]  ;;  %v262_v22 = vld [vmem:[#allocation5 + $0x618] sm:$0xff]  ;;  %v207_v24 = vld [vmem:[#allocation5 + $0x460] sm:$0xff]  ;;  %v891_v27 = vpack.c.bf16 %v210_v20, %v208_v16 }
  0x68   :  { %864 = vmatprep.subr.bf16.mxu0 %v863_v5  ;;  %v807_v5 = vpack.c.bf16 %v126_v61, %v124_v60  ;;  %v885_v11 = vpack.c.bf16 %v201_v1, %v199_v0  ;;  %v129_v19 = vld [vmem:[#allocation5 + $0x1f0] sm:$0xff]  ;;  %v212_v28 = vld [vmem:[#allocation5 + $0x488] sm:$0xff]  ;;  %v266_v34 = vld [vmem:[#allocation5 + $0x638] sm:$0xff]  ;;  %v1125_v61 = vmov 0.0  }
  0x69   :  { %v813_v26 = vpack.c.bf16 %v129_v19, %v127_v18  ;;  %v261_v31 = vld [vmem:[#allocation5 + $0x610] sm:$0xff]  ;;  %v264_v33 = vld [vmem:[#allocation5 + $0x628] sm:$0xff]  ;;  %v211_v35 = vld [vmem:[#allocation5 + $0x480] sm:$0xff] }
  0x6a   :  { %794 = vmatpush1.bf16.msra.mxu1 %v793_v29  ;;  %v943_v29 = vpack.c.bf16 %v262_v22, %v260_v21  ;;  %v213_v37 = vld [vmem:[#allocation5 + $0x490] sm:$0xff]  ;;  %v947_v43 = vpack.c.bf16 %v266_v34, %v264_v33  ;;  %v218_v46 = vld [vmem:[#allocation5 + $0x4b8] sm:$0xff]  ;;  %v268_v47 = vld [vmem:[#allocation5 + $0x648] sm:$0xff] }
  0x6b   :  { %866 = vmatpush1.bf16.msra.mxu0 %v865_v13  ;;  %796 = vmatprep.subr.bf16.mxu1 %v795_v32  ;;  %v205_v13 = vld [vmem:[#allocation5 + $0x450] sm:$0xff]  ;;  %v214_v32 = vld [vmem:[#allocation5 + $0x498] sm:$0xff]  ;;  %v897_v49 = vpack.c.bf16 %v213_v37, %v211_v35  ;;  %v272_v59 = vld [vmem:[#allocation5 + $0x668] sm:$0xff] }
  0x6c   :  { %868 = vmatprep.subr.bf16.mxu0 %v867_v17  ;;  %v811_v17 = vpack.c.bf16 %v130_v10, %v128_v9  ;;  %v889_v23 = vpack.c.bf16 %v205_v13, %v203_v12  ;;  %v65_v40 = vld [vmem:[#allocation2 + $0x28] sm:$0xff]  ;;  %v270_v48 = vld [vmem:[#allocation5 + $0x658] sm:$0xff]  ;;  %v276_v8 = vld [vmem:[#allocation5 + $0x688] sm:$0xff] }
  0x6d   :  { %v265_v45 = vld [vmem:[#allocation5 + $0x630] sm:$0xff]  ;;  %v951_v55 = vpack.c.bf16 %v270_v48, %v268_v47  ;;  %v222_v58 = vld [vmem:[#allocation5 + $0x4d8] sm:$0xff]  ;;  %v280_v20 = vld [vmem:[#allocation5 + $0x6a8] sm:$0xff] }
  0x6e   :  { %798 = vmatpush1.bf16.msra.mxu1 %v797_v41  ;;  %v895_v41 = vpack.c.bf16 %v214_v32, %v212_v28  ;;  %v217_v51 = vld [vmem:[#allocation5 + $0x4b0] sm:$0xff]  ;;  %v274_v60 = vld [vmem:[#allocation5 + $0x678] sm:$0xff]  ;;  %v284_v32 = vld [vmem:[#allocation5 + $0x6c8] sm:$0xff] }
  0x6f   :  { %870 = vmatpush1.bf16.msra.mxu0 %v869_v25  ;;  %800 = vmatprep.subr.bf16.mxu1 %v799_v44  ;;  %v209_v25 = vld [vmem:[#allocation5 + $0x470] sm:$0xff]  ;;  %v263_v44 = vld [vmem:[#allocation5 + $0x620] sm:$0xff]  ;;  %v955_v4 = vpack.c.bf16 %v274_v60, %v272_v59  ;;  %v226_v7 = vld [vmem:[#allocation5 + $0x4f8] sm:$0xff] }
  0x70   :  { %872 = vmatprep.subr.bf16.mxu0 %v871_v30  ;;  %v259_v30 = vld [vmem:[#allocation5 + $0x600] sm:$0xff]  ;;  %v893_v36 = vpack.c.bf16 %v209_v25, %v207_v24  ;;  %v949_v52 = vpack.c.bf16 %v265_v45, %v263_v44  ;;  %v269_v57 = vld [vmem:[#allocation5 + $0x650] sm:$0xff]  ;;  %v278_v9 = vld [vmem:[#allocation5 + $0x698] sm:$0xff] }
  0x71   :  { %v945_v39 = vpack.c.bf16 %v261_v31, %v259_v30  ;;  %v221_v0 = vld [vmem:[#allocation5 + $0x4d0] sm:$0xff]  ;;  %v959_v16 = vpack.c.bf16 %v278_v9, %v276_v8  ;;  %v230_v19 = vld [vmem:[#allocation5 + $0x518] sm:$0xff]  ;;  %v231_v35 = vld [vmem:[#allocation5 + $0x520] sm:$0xff] }
  0x72   :  { %802 = vmatpush1.bf16.msra.mxu1 %v801_v53  ;;  %v273_v6 = vld [vmem:[#allocation5 + $0x670] sm:$0xff]  ;;  %v282_v21 = vld [vmem:[#allocation5 + $0x6b8] sm:$0xff]  ;;  %v288_v44 = vld [vmem:[#allocation5 + $0x6e8] sm:$0xff] }
  0x73   :  { %874 = vmatpush1.bf16.msra.mxu0 %v873_v38  ;;  %804 = vmatprep.subr.bf16.mxu1 %v803_v56  ;;  %v60_v38 = vld [vmem:[#allocation2] sm:$0xff]  ;;  %v267_v56 = vld [vmem:[#allocation5 + $0x640] sm:$0xff]  ;;  %v225_v12 = vld [vmem:[#allocation5 + $0x4f0] sm:$0xff]  ;;  %v963_v28 = vpack.c.bf16 %v282_v21, %v280_v20 }
  0x74   :  { %876 = vmatprep.subr.bf16.mxu0 %v875_v42  ;;  %v216_v42 = vld [vmem:[#allocation5 + $0x4a8] sm:$0xff]  ;;  %v953_v1 = vpack.c.bf16 %v269_v57, %v267_v56  ;;  %v277_v18 = vld [vmem:[#allocation5 + $0x690] sm:$0xff]  ;;  %v234_v31 = vld [vmem:[#allocation5 + $0x538] sm:$0xff] }
  0x75   :  { %v899_v53 = vpack.c.bf16 %v218_v46, %v216_v42  ;;  %v229_v24 = vld [vmem:[#allocation5 + $0x510] sm:$0xff]  ;;  %v286_v33 = vld [vmem:[#allocation5 + $0x6d8] sm:$0xff]  ;;  %v235_v47 = vld [vmem:[#allocation5 + $0x540] sm:$0xff] }
  0x76   :  { %806 = vmatpush1.bf16.msra.mxu1 %v805_v2  ;;  %v281_v30 = vld [vmem:[#allocation5 + $0x6b0] sm:$0xff]  ;;  %v290_v45 = vld [vmem:[#allocation5 + $0x6f8] sm:$0xff]  ;;  %v239_v59 = vld [vmem:[#allocation5 + $0x560] sm:$0xff] }
  0x77   :  { %878 = vmatpush1.bf16.msra.mxu0 %v877_v50  ;;  %808 = vmatprep.subr.bf16.mxu1 %v807_v5  ;;  %v215_v50 = vld [vmem:[#allocation5 + $0x4a0] sm:$0xff]  ;;  %v285_v42 = vld [vmem:[#allocation5 + $0x6d0] sm:$0xff] }
  0x78   :  { %880 = vmatprep.subr.bf16.mxu0 %v879_v54  ;;  %v220_v54 = vld [vmem:[#allocation5 + $0x4c8] sm:$0xff]  ;;  %v271_v5 = vld [vmem:[#allocation5 + $0x660] sm:$0xff]  ;;  %v241_v60 = vld [vmem:[#allocation5 + $0x570] sm:$0xff] }
  0x79   :  { %v903_v2 = vpack.c.bf16 %v222_v58, %v220_v54  ;;  %v957_v13 = vpack.c.bf16 %v273_v6, %v271_v5  ;;  %v240_v54 = vld [vmem:[#allocation5 + $0x568] sm:$0xff]  ;;  %v250_v5 = vld [vmem:[#allocation5 + $0x5b8] sm:$0xff]  ;;  %v247_v8 = vld [vmem:[#allocation5 + $0x5a0] sm:$0xff] }
  0x7a   :  { %439 = vmatmul.mubr.f32.vlgmr.msra.gmra.mrb[0].mxu0 %v62_v62  ;;  %810 = vmatpush1.bf16.msra.mxu1 %v809_v14  ;;  %v901_v62 = vpack.c.bf16 %v217_v51, %v215_v50  ;;  %v237_v50 = vld [vmem:[#allocation5 + $0x550] sm:$0xff]  ;;  %v971_v51 = vpack.c.bf16 %v290_v45, %v288_v44  ;;  %v255_v20 = vld [vmem:[#allocation5 + $0x5e0] sm:$0xff] }
  0x7b   :  { %882 = vmatpush1.bf16.msra.mxu0 %v881_v63  ;;  %812 = vmatprep.subr.bf16.mxu1 %v811_v17  ;;  %v219_v63 = vld [vmem:[#allocation5 + $0x4c0] sm:$0xff]  ;;  %v921_v56 = vpack.c.bf16 %v237_v50, %v235_v47  ;;  %v249_v9 = vld [vmem:[#allocation5 + $0x5b0] sm:$0xff] }
  0x7c   :  { %884 = vmatprep.subr.bf16.mxu0 %v883_v3  ;;  %509 = vmatprep.mubr.f32.mxu0 %v65_v40  ;;  %v224_v3 = vld [vmem:[#allocation5 + $0x4e8] sm:$0xff]  ;;  %v905_v10 = vpack.c.bf16 %v221_v0, %v219_v63  ;;  %v275_v17 = vld [vmem:[#allocation5 + $0x680] sm:$0xff]  ;;  %v967_v40 = vpack.c.bf16 %v286_v33, %v284_v32  ;;  %v925_v63 = vpack.c.bf16 %v241_v60, %v239_v59  ;;  %v66_v0 = vld [vmem:[#allocation2 + $0x30] sm:$0xff] }
  0x7d   :  { %v907_v14 = vpack.c.bf16 %v226_v7, %v224_v3  ;;  %v961_v25 = vpack.c.bf16 %v277_v18, %v275_v17  ;;  %v245_v3 = vld [vmem:[#allocation5 + $0x590] sm:$0xff]  ;;  %v258_v17 = vld [vmem:[#allocation5 + $0x5f8] sm:$0xff]  ;;  %v613_v47 = vld [vmem:[#allocation7 + $0xc0] sm:$0xff] }
  0x7e   :  { %814 = vmatpush1.bf16.msra.mxu1 %v813_v26  ;;  %v257_v21 = vld [vmem:[#allocation5 + $0x5f0] sm:$0xff]  ;;  %v617_v60 = vld [vmem:[#allocation7 + $0xe0] sm:$0xff] }
  0x7f   :  { %886 = vmatpush1.bf16.msra.mxu0 %v885_v11  ;;  %944 = vmatprep.subr.bf16.mxu1 %v943_v29  ;;  %v223_v11 = vld [vmem:[#allocation5 + $0x4e0] sm:$0xff]  ;;  %v591_v33 = vld [vmem:[#allocation7 + $0x10] sm:$0xff] }
  0x80   :  { %888 = vmatprep.subr.bf16.mxu0 %v887_v15  ;;  %v228_v15 = vld [vmem:[#allocation5 + $0x508] sm:$0xff]  ;;  %v909_v22 = vpack.c.bf16 %v225_v12, %v223_v11  ;;  %v279_v29 = vld [vmem:[#allocation5 + $0x6a0] sm:$0xff]  ;;  %v254_v11 = vld [vmem:[#allocation5 + $0x5d8] sm:$0xff]  ;;  %v933_v12 = vpack.c.bf16 %v249_v9, %v247_v8 }
  0x81   :  { %368 = vmatmul.mubr.f32.vlgmr.msra.gmra.mrb[0].mxu1 %v60_v38  ;;  %v911_v26 = vpack.c.bf16 %v230_v19, %v228_v15  ;;  %v965_v37 = vpack.c.bf16 %v281_v30, %v279_v29  ;;  %v253_v15 = vld [vmem:[#allocation5 + $0x5d0] sm:$0xff]  ;;  %v608_v30 = vld [vmem:[#allocation7 + $0x98] sm:$0xff] }
  0x82   :  { %946 = vmatpush1.bf16.msra.mxu1 %v945_v39  ;;  %580 = vmatprep.mubr.f32.mxu1 %v1125_v61  ;;  %v236_v39 = vld [vmem:[#allocation5 + $0x548] sm:$0xff]  ;;  %v607_v29 = vld [vmem:[#allocation7 + $0x90] sm:$0xff] }
  0x83   :  { %890 = vmatpush1.bf16.msra.mxu0 %v889_v23  ;;  %948 = vmatprep.subr.bf16.mxu1 %v947_v43  ;;  %v227_v23 = vld [vmem:[#allocation5 + $0x500] sm:$0xff]  ;;  %v238_v43 = vld [vmem:[#allocation5 + $0x558] sm:$0xff]  ;;  %v244_v61 = vld [vmem:[#allocation5 + $0x588] sm:$0xff]  ;;  %v979_v32 = vpack.c.bf16 %v608_v30, %v607_v29 }
  0x84   :  { %892 = vmatprep.subr.bf16.mxu0 %v891_v27  ;;  %v232_v27 = vld [vmem:[#allocation5 + $0x528] sm:$0xff]  ;;  %v913_v34 = vpack.c.bf16 %v229_v24, %v227_v23  ;;  %v605_v24 = vld [vmem:[#allocation7 + $0x80] sm:$0xff]  ;;  %v595_v45 = vld [vmem:[#allocation7 + $0x30] sm:$0xff] }
  0x85   :  { %v915_v38 = vpack.c.bf16 %v234_v31, %v232_v27  ;;  %v64_v23 = vld [vmem:[#allocation2 + $0x20] sm:$0xff] }
  0x86   :  { %950 = vmatpush1.bf16.msra.mxu1 %v949_v52  ;;  %v287_v52 = vld [vmem:[#allocation5 + $0x6e0] sm:$0xff]  ;;  %v715_v30 = vld [vmem:[%s1215_s4] ss:$0 sm:$0xff] }
  0x87   :  { %894 = vmatpush1.bf16.msra.mxu0 %v893_v36  ;;  %952 = vmatprep.subr.bf16.mxu1 %v951_v55  ;;  %v233_v36 = vld [vmem:[#allocation5 + $0x530] sm:$0xff]  ;;  %v242_v55 = vld [vmem:[#allocation5 + $0x578] sm:$0xff] }
  0x88   :  { %896 = vmatprep.subr.bf16.mxu0 %v895_v41  ;;  %v283_v41 = vld [vmem:[#allocation5 + $0x6c0] sm:$0xff]  ;;  %v917_v46 = vpack.c.bf16 %v233_v36, %v231_v35  ;;  %v923_v58 = vpack.c.bf16 %v242_v55, %v240_v54  ;;  %v610_v36 = vld [vmem:[#allocation7 + $0xa8] sm:$0xff]  ;;  %v616_v54 = vld [vmem:[#allocation7 + $0xd8] sm:$0xff] }
  0x89   :  { %v969_v48 = vpack.c.bf16 %v285_v42, %v283_v41  ;;  %v609_v35 = vld [vmem:[#allocation7 + $0xa0] sm:$0xff]  ;;  %v611_v41 = vld [vmem:[#allocation7 + $0xb0] sm:$0xff]  ;;  %v612_v42 = vld [vmem:[#allocation7 + $0xb8] sm:$0xff] }
  0x8a   :  { %954 = vmatpush1.bf16.msra.mxu1 %v953_v1  ;;  %v987_v44 = vpack.c.bf16 %v612_v42, %v611_v41 }
  0x8b   :  { %898 = vmatpush1.bf16.msra.mxu0 %v897_v49  ;;  %956 = vmatprep.subr.bf16.mxu1 %v955_v4  ;;  %v919_v49 = vpack.c.bf16 %v238_v43, %v236_v39  ;;  %v248_v4 = vld [vmem:[#allocation5 + $0x5a8] sm:$0xff]  ;;  %v593_v39 = vld [vmem:[#allocation7 + $0x20] sm:$0xff] }
  0x8c   :  { %900 = vmatprep.subr.bf16.mxu0 %v899_v53  ;;  %v289_v53 = vld [vmem:[#allocation5 + $0x6f0] sm:$0xff]  ;;  %v931_v7 = vpack.c.bf16 %v250_v5, %v248_v4 }
  0x8d   :  { %v973_v57 = vpack.c.bf16 %v289_v53, %v287_v52  ;;  %v598_v52 = vld [vmem:[#allocation7 + $0x48] sm:$0xff]  ;;  %v615_v53 = vld [vmem:[#allocation7 + $0xd0] sm:$0xff] }
  0x8e   :  { %958 = vmatpush1.bf16.msra.mxu1 %v957_v13  ;;  %v603_v5 = vld [vmem:[#allocation7 + $0x70] sm:$0xff] }
  0x8f   :  { %902 = vmatpush1.bf16.msra.mxu0 %v901_v62  ;;  %960 = vmatprep.subr.bf16.mxu1 %v959_v16  ;;  %v246_v62 = vld [vmem:[#allocation5 + $0x598] sm:$0xff]  ;;  %v256_v16 = vld [vmem:[#allocation5 + $0x5e8] sm:$0xff] }
  0x90   :  { %904 = vmatprep.subr.bf16.mxu0 %v903_v2  ;;  %v927_v1 = vpack.c.bf16 %v246_v62, %v244_v61  ;;  %v243_v2 = vld [vmem:[#allocation5 + $0x580] sm:$0xff]  ;;  %v939_v19 = vpack.c.bf16 %v258_v17, %v256_v16  ;;  %v618_v61 = vld [vmem:[#allocation7 + $0xe8] sm:$0xff] }
  0x91   :  { %v929_v6 = vpack.c.bf16 %v245_v3, %v243_v2  ;;  %v999_v62 = vpack.c.bf16 %v618_v61, %v617_v60  ;;  %v619_v2 = vld [vmem:[#allocation7 + $0xf0] sm:$0xff]  ;;  %v620_v3 = vld [vmem:[#allocation7 + $0xf8] sm:$0xff] }
  0x92   :  { %962 = vmatpush1.bf16.msra.mxu1 %v961_v25  ;;  %v606_v25 = vld [vmem:[#allocation7 + $0x88] sm:$0xff]  ;;  %v1003_v4 = vpack.c.bf16 %v620_v3, %v619_v2 }
  0x93   :  { %906 = vmatpush1.bf16.msra.mxu0 %v905_v10  ;;  %964 = vmatprep.subr.bf16.mxu1 %v963_v28  ;;  %v252_v10 = vld [vmem:[#allocation5 + $0x5c8] sm:$0xff]  ;;  %v975_v27 = vpack.c.bf16 %v606_v25, %v605_v24 }
  0x94   :  { %908 = vmatprep.subr.bf16.mxu0 %v907_v14  ;;  %v935_v13 = vpack.c.bf16 %v254_v11, %v252_v10  ;;  %v251_v14 = vld [vmem:[#allocation5 + $0x5c0] sm:$0xff]  ;;  %v590_v28 = vld [vmem:[#allocation7 + $0x8] sm:$0xff] }
  0x95   :  { %v937_v18 = vpack.c.bf16 %v253_v15, %v251_v14  ;;  %v291_v15 = vld [vmem:[%s1213_s2] sm:$0x3]  ;;  %s1126_s2 = smov [#allocation8]  }
  0x96   :  { %966 = vmatpush1.bf16.msra.mxu1 %v965_v37  ;;  %s705_s9 = sshll.u32 %s1126_s2, 4  ;;  %s706_s9 = int_to_ptr.vmem [resolvable:$true] %s705_s9 }
  0x97   :  { %910 = vmatpush1.bf16.msra.mxu0 %v909_v22  ;;  %968 = vmatprep.subr.bf16.mxu1 %v967_v40  ;;  %v941_v22 = vpack.c.bf16 %v257_v21, %v255_v20  ;;  %v594_v40 = vld [vmem:[#allocation7 + $0x28] sm:$0xff]  ;;  %s1090_s10 = scalar_lea.vmem %s706_s9, 128  ;;  %p1095_p11 = scmp.lt.s32.totalorder %s706_s9, %s706_s9 }
  0x98   :  { %912 = vmatprep.subr.bf16.mxu0 %v911_v26  ;;  %v589_v26 = vld [vmem:[#allocation7] sm:$0xff]  ;;  %v985_v43 = vpack.c.bf16 %v594_v40, %v593_v39  ;;  %p1091_p10 = scmp.ne.s32.totalorder %s706_s9, %s1090_s10  ;;  %p1096_p12 = scmp.lt.s32.totalorder %s1090_s10, %s1090_s10 }
  0x99   :  { %v977_v31 = vpack.c.bf16 %v590_v28, %v589_v26 }
  0x9a   :  { %970 = vmatpush1.bf16.msra.mxu1 %v969_v48  ;;  %v614_v48 = vld [vmem:[#allocation7 + $0xc8] sm:$0xff]  ;;  %p1097_p13 = por %p1096_p12, %p1095_p11 }
  0x9b   :  { %914 = vmatpush1.bf16.msra.mxu0 %v913_v34  ;;  %972 = vmatprep.subr.bf16.mxu1 %v971_v51  ;;  %v592_v34 = vld [vmem:[#allocation7 + $0x18] sm:$0xff]  ;;  %v991_v50 = vpack.c.bf16 %v614_v48, %v613_v47  ;;  %v597_v51 = vld [vmem:[#allocation7 + $0x40] sm:$0xff] }
  0x9c   :  { %916 = vmatprep.subr.bf16.mxu0 %v915_v38  ;;  %v981_v37 = vpack.c.bf16 %v592_v34, %v591_v33  ;;  %v983_v38 = vpack.c.bf16 %v610_v36, %v609_v35  ;;  %v993_v55 = vpack.c.bf16 %v598_v52, %v597_v51  ;;  %p1098_p0 = pnand %p1097_p13, %p1091_p10 }
  0x9e   :  { %974 = vmatpush1.bf16.msra.mxu1 %v973_v57  ;;  %v599_v57 = vld [vmem:[#allocation7 + $0x50] sm:$0xff] }
  0x9f   :  { %918 = vmatpush1.bf16.msra.mxu0 %v917_v46  ;;  %976 = vmatprep.subr.bf16.mxu1 %v975_v27  ;;  %v596_v46 = vld [vmem:[#allocation7 + $0x38] sm:$0xff] }
  0xa0   :  { %920 = vmatprep.subr.bf16.mxu0 %v919_v49  ;;  %v989_v49 = vpack.c.bf16 %v596_v46, %v595_v45 }
  0xa1   :  { %581 = vmatmul.mubr.f32.vlgmr.msra.gmra.mrb[2].mxu1 %v66_v0  ;;  %v602_v0 = vld [vmem:[#allocation7 + $0x68] sm:$0xff] }
  0xa2   :  { %978 = vmatpush3.bf16.msra.mxu1 %v977_v31 }
  0xa3   :  { %922 = vmatpush1.bf16.msra.mxu0 %v921_v56  ;;  %980 = vmatprep.subr.bf16.mxu1 %v979_v32  ;;  %v995_v56 = vpack.c.bf16 %v616_v54, %v615_v53 }
  0xa4   :  { %924 = vmatprep.subr.bf16.mxu0 %v923_v58  ;;  %v600_v58 = vld [vmem:[#allocation7 + $0x58] sm:$0xff] }
  0xa5   :  { %v997_v59 = vpack.c.bf16 %v600_v58, %v599_v57 }
  0xa6   :  { %982 = vmatpush3.bf16.msra.mxu1 %v981_v37 }
  0xa7   :  { %926 = vmatpush1.bf16.msra.mxu0 %v925_v63  ;;  %984 = vmatprep.subr.bf16.mxu1 %v983_v38  ;;  %v601_v63 = vld [vmem:[#allocation7 + $0x60] sm:$0xff] }
  0xa8   :  { %928 = vmatprep.subr.bf16.mxu0 %v927_v1  ;;  %v1001_v1 = vpack.c.bf16 %v602_v0, %v601_v63 }
  0xaa   :  { %986 = vmatpush3.bf16.msra.mxu1 %v985_v43 }
  0xab   :  { %930 = vmatpush1.bf16.msra.mxu0 %v929_v6  ;;  %988 = vmatprep.subr.bf16.mxu1 %v987_v44  ;;  %v604_v6 = vld [vmem:[#allocation7 + $0x78] sm:$0xff] }
  0xac   :  { %932 = vmatprep.subr.bf16.mxu0 %v931_v7  ;;  %v1005_v7 = vpack.c.bf16 %v604_v6, %v603_v5 }
  0xae   :  { %990 = vmatpush3.bf16.msra.mxu1 %v989_v49 }
  0xaf   :  { %934 = vmatpush1.bf16.msra.mxu0 %v933_v12  ;;  %992 = vmatprep.subr.bf16.mxu1 %v991_v50  ;;  %v293_v12 = vlaneseq }
  0xb0   :  { %936 = vmatprep.subr.bf16.mxu0 %v935_v13 }
  0xb1   :  { %v294_v13 = vshrl.u32 %v293_v12, 7 }
  0xb2   :  { %994 = vmatpush3.bf16.msra.mxu1 %v993_v55 }
  0xb3   :  { %938 = vmatpush1.bf16.msra.mxu0 %v937_v18  ;;  %996 = vmatprep.subr.bf16.mxu1 %v995_v56  ;;  %v295_v14 = vsub.s32 0, %v294_v13  ;;  %v299_v16 = vsub.s32 1, %v294_v13 }
  0xb4   :  { %940 = vmatprep.subr.bf16.mxu0 %v939_v19 }
  0xb5   :  { %v296_v17 = vrot.slane %v291_v15, %v295_v14  ;;  %v300_v18 = vrot.slane %v291_v15, %v299_v16 }
  0xb6   :  { %998 = vmatpush3.bf16.msra.mxu1 %v997_v59 }
  0xb7   :  { %942 = vmatpush1.bf16.msra.mxu0 %v941_v22  ;;  %1000 = vmatprep.subr.bf16.mxu1 %v999_v62 }
  0xba   :  { %510 = vmatmul.mubr.f32.vlgmr.msra.gmra.mrb[0].mxu0 %v64_v23  ;;  %1002 = vmatpush3.bf16.msra.mxu1 %v1001_v1 }
  0xbb   :  { %1004 = vmatprep.subr.bf16.mxu1 %v1003_v4 }
  0xbe   :  { %1006 = vmatpush3.bf16.msra.mxu1 %v1005_v7 }
 0x154   :  { %v369_v8 = vpop.f32.mrb[0].mxu1 }
 0x155   :  { %v371_v9 = vpop.f32.mrb[1].mxu1  ;;  %v370_v19 = vadd.f32 %v369_v8, %v296_v17 }
 0x156   :  { %v372_v20 = vadd.f32 %v371_v9, %v300_v18 }
 0x174   :  { %v582_v10 = vpop.f32.mrb[2].mxu1 }
 0x175   :  { %v584_v11 = vpop.f32.mrb[3].mxu1 }
 0x18d   :  { %v511_v21 = vpop.f32.mrb[0].mxu0 }
 0x18e   :  { %v1008_v22 = vadd.f32 %v511_v21, %v370_v19  ;;  %v513_v23 = vpop.f32.mrb[1].mxu0 }
 0x18f   :  { %v1011_v24 = vadd.f32 %v513_v23, %v372_v20 }
 0x190   :  { %v1009_v25 = vadd.f32 %v1008_v22, %v582_v10 }
 0x191   :  { %v1012_v26 = vadd.f32 %v1011_v24, %v584_v11 }
 0x192   :  { %v587_v28 = vmax.f32 %v1009_v25, 0.0 }
 0x193   :  { %v588_v27 = vmax.f32 %v1012_v26, 0.0 }
 0x195   :  { %692 = vmatprep.mubr.f32.mxu1 %v588_v27 }
 0x196   :  { %693 = vmatmul.mubr.f32.vlgmr.msra.gmra.mrb[4].mxu1 %v587_v28 }
 0x269   :  { %v748_v29 = vpop.f32.mrb[4].mxu1 }
 0x26a   :  { %v749_v31 = vpop.f32.mrb[5].mxu1 }
 0x26b   :  { %v750_v32 = vadd.f32 %v749_v31, %v748_v29 }
 0x26d   :  { %v695_v33 = vadd.f32 %v750_v32, %v715_v30 }
 0x26f   :  { %698 = vst [vmem:[#allocation8] sm:$0xff] %v695_v33 }
 0x270   :  { %1101 = shalt.err (!%p1098_p0)
}
 0x271   :  { %s1102_s13 = scalar_lea.hbm %s1216_s5, 128 }
 0x272   :  { %p1103_p1 = scmp.ne.s32.totalorder %s1216_s5, %s1102_s13  ;;  %p1106_p2 = scmp.lt.u32.totalorder %s1102_s13, %s1216_s5 }
 0x274   :  { %p1108_p3 = pnand %p1106_p2, %p1103_p1 }
 0x276   :  { %1111 = shalt.err (!%p1108_p3)
}
 0x277   :  { %708 = dma.vmem_to_hbm [thread:$0]  %s706_s9, 128, %s1216_s5, [#allocation4]  }
 0x278   :  { %1116 = dma.done.wait [#allocation4], 128  }
 0x279   :  { %1117 = vsyncadd [#allocation4], 4294967168 }
 0x27a   :  { %712 = vsyncpa [#allocation3], 1 }
 0x27b   :  { %713 = vsyncpa [#allocation6], 1 }
 0x27c   :  { %714 = vsyncpa [#allocation4], 1 }

</bundles_post_ra>
